<compile_context>
chip_gen: v7x
topology: tpu7x:2x2x1
jax: 0.10.0
libtpu: 0.0.40
codegen_flags: <defaults>
</compile_context>

<pallas_src>
import jax
import jax.numpy as jnp
from jax.experimental import pallas as pl
from jax.experimental.pallas import tpu as pltpu

LN_EPS = 1e-6  # TRAR/MCAN LayerNorm: eps added to std (not variance), unbiased std


def _round_up(x, m):
    return ((x + m - 1) // m) * m


# ----------------------------------------------------------------------------
# Kernel body. Grid = (batch_blocks, out_blocks); out_blocks is the inner axis.
# At j == 0 we compute add + LayerNorm once per batch tile and stash it in a
# VMEM scratch; every j just runs the (lane-dense) MXU matmul for its N tile.
# ----------------------------------------------------------------------------
def _cls_layer_all_kernel(lang_ref, img_ref, aud_ref,
                          gamma_ref, beta_ref, w_ref, b_ref,
                          out_ref, normed_ref):
    @pl.when(pl.program_id(1) == 0)
    def _():
        x = (img_ref[...].astype(jnp.float32)
             + aud_ref[...].astype(jnp.float32)
             + lang_ref[...].astype(jnp.float32))
        d = x.shape[-1]
        mean = jnp.mean(x, axis=-1, keepdims=True)
        xc = x - mean
        # torch.Tensor.std default is unbiased (divide by D-1)
        var = jnp.sum(xc * xc, axis=-1, keepdims=True) * (1.0 / float(d - 1))
        inv = 1.0 / (jnp.sqrt(var) + LN_EPS)          # per-row reciprocal [bb, 1]
        normed_ref[...] = ((xc * inv) * gamma_ref[...].astype(jnp.float32)
                           + beta_ref[...].astype(jnp.float32))

    w = w_ref[...]
    # Matmul in the weight's dtype (bf16 weights -> native MXU), f32 accumulate.
    y = jnp.dot(normed_ref[...].astype(w.dtype), w,
                preferred_element_type=jnp.float32)
    out_ref[...] = (y + b_ref[...].astype(jnp.float32)).astype(out_ref.dtype)


# ----------------------------------------------------------------------------
# One-time parameter preparation (call at init, NOT per forward):
#   - weight transposed to [D, O_pad], columns zero-padded to lane-dense O_pad
#   - bias zero-padded to O_pad
#   - gamma / beta reshaped to [1, D] for broadcasting
# ----------------------------------------------------------------------------
def prepare_cls_params(gamma, beta, weight, bias):
    O, D = weight.shape
    o_pad = _round_up(O, 128)
    if o_pad > 512:  # keep a divisor of the 512-wide default N tile
        o_pad = _round_up(O, 512)
    w_t = jnp.zeros((D, o_pad), weight.dtype).at[:, :O].set(weight.T)
    b_pad = jnp.zeros((o_pad,), bias.dtype).at[:O].set(bias)
    return dict(
        gamma=gamma.reshape(1, D),
        beta=beta.reshape(1, D),
        w_t=w_t,
        bias=b_pad.reshape(1, o_pad),
        out_dim=O,
    )


def _choose_block_o(o_pad):
    if o_pad <= 512:
        return o_pad
    for cand in (512, 256, 128):
        if o_pad % cand == 0:
            return cand
    return 128


def _choose_block_b(B, D, block_o, budget_bytes):
    bb = min(_round_up(B, 8), 512)
    while bb > 8:
        # 2 buffers x (3 feature tiles + out tile) + f32 normed scratch, f32-sized
        est = (2 * (3 * bb * D + bb * block_o) + bb * D) * 4
        if est <= budget_bytes:
            break
        bb //= 2
    return max(_round_up(bb, 8), 8)


def cls_layer_all_apply(lang_feat, img_feat, audio_feat, params,
                        *, block_b=None, block_o=None):
    """lang/img/audio: [B, D]; params from prepare_cls_params. Returns [B, O]."""
    B, D = lang_feat.shape
    gamma2, beta2 = params["gamma"], params["beta"]
    w_t, bias2, O = params["w_t"], params["bias"], params["out_dim"]
    o_pad = w_t.shape[1]

    if block_o is None:
        block_o = _choose_block_o(o_pad)
    if block_b is None:
        block_b = _choose_block_b(B, D, block_o, budget_bytes=24 * 1024 * 1024)

    # Pad the batch so block_b divides it (zero rows are harmless: per-row LN).
    b_pad = _round_up(B, block_b)
    if b_pad != B:
        pad = ((0, b_pad - B), (0, 0))
        lang_feat = jnp.pad(lang_feat, pad)
        img_feat = jnp.pad(img_feat, pad)
        audio_feat = jnp.pad(audio_feat, pad)

    grid = (b_pad // block_b, o_pad // block_o)

    feat_spec = pl.BlockSpec((block_b, D), lambda i, j: (i, 0))
    gb_spec = pl.BlockSpec((1, D), lambda i, j: (0, 0))
    w_spec = pl.BlockSpec((D, block_o), lambda i, j: (0, j))
    b_spec = pl.BlockSpec((1, block_o), lambda i, j: (0, j))
    out_spec = pl.BlockSpec((block_b, block_o), lambda i, j: (i, j))

    # VMEM budget: double-buffered tiles + weight tile + normed scratch + slack.
    vmem_est = (2 * (3 * block_b * D + block_b * block_o + D * block_o)
                + block_b * D) * 4 + (2 << 20)
    vmem_limit = int(min(max(2 * vmem_est, 16 << 20), 64 << 20))

    out = pl.pallas_call(
        _cls_layer_all_kernel,
        out_shape=jax.ShapeDtypeStruct((b_pad, o_pad), lang_feat.dtype),
        grid_spec=pltpu.PrefetchScalarGridSpec(
            num_scalar_prefetch=0,
            grid=grid,
            in_specs=[feat_spec, feat_spec, feat_spec,
                      gb_spec, gb_spec, w_spec, b_spec],
            out_specs=out_spec,
            scratch_shapes=[pltpu.VMEM((block_b, D), jnp.float32)],
        ),
        compiler_params=pltpu.CompilerParams(
            dimension_semantics=("parallel", "arbitrary"),
            vmem_limit_bytes=vmem_limit,
        ),
    )(lang_feat, img_feat, audio_feat, gamma2, beta2, w_t, bias2)

    return out[:B, :O]


def cls_layer_all(lang_feat, img_feat, audio_feat, gamma, beta, weight, bias,
                  **kwargs):
    """Convenience wrapper matching the PyTorch module signature.
    For production use, call prepare_cls_params ONCE and reuse the result."""
    params = prepare_cls_params(gamma, beta, weight, bias)
    return cls_layer_all_apply(lang_feat, img_feat, audio_feat, params, **kwargs)


def _reference(lang, img, aud, gamma, beta, weight, bias):
    x = (img + aud + lang).astype(jnp.float32)
    mean = jnp.mean(x, axis=-1, keepdims=True)
    xc = x - mean
    std = jnp.sqrt(jnp.sum(xc * xc, axis=-1, keepdims=True) / (x.shape[-1] - 1))
    normed = gamma * xc / (std + LN_EPS) + beta
    return normed @ weight.T + bias


if __name__ == "__main__":
    key = jax.random.PRNGKey(0)
    B, D, O = 8, 32, 16   # batch, input_dim, output_dim (small verification shapes)

    k1, k2, k3, k4, k5 = jax.random.split(key, 5)
    lang = jax.random.normal(k1, (B, D), jnp.float32)
    img = jax.random.normal(k2, (B, D), jnp.float32)
    aud = jax.random.normal(k3, (B, D), jnp.float32)

    gamma = jnp.ones((D,), jnp.float32)
    beta = jnp.zeros((D,), jnp.float32)
    weight = jax.random.normal(k4, (O, D), jnp.float32) * (1.0 / jnp.sqrt(D))
    bias = jax.random.normal(k5, (O,), jnp.float32) * 0.01

    # Prepare params once (transpose + lane-dense padding), then apply.
    params = prepare_cls_params(gamma, beta, weight, bias)
    out = cls_layer_all_apply(lang, img, aud, params)
    out = jax.block_until_ready(out)

    ref = _reference(lang, img, aud, gamma, beta, weight, bias)
    assert out.shape == (B, O), f"bad output shape {out.shape}"
    max_err = float(jnp.max(jnp.abs(out - ref)))
    assert max_err < 1e-4, f"max abs err {max_err}"
    print("KERNEL_OK")
</pallas_src>

<mosaic_0001>
module attributes {stable_mosaic.version = 11 : i64} {
  func.func @_cls_layer_all_kernel(%arg0: i32, %arg1: i32, %arg2: memref<8x32xf32, #tpu.memory_space<vmem>>, %arg3: memref<8x32xf32, #tpu.memory_space<vmem>>, %arg4: memref<8x32xf32, #tpu.memory_space<vmem>>, %arg5: memref<1x32xf32, #tpu.memory_space<vmem>>, %arg6: memref<1x32xf32, #tpu.memory_space<vmem>>, %arg7: memref<32x128xf32, #tpu.memory_space<vmem>>, %arg8: memref<1x128xf32, #tpu.memory_space<vmem>>, %arg9: memref<8x128xf32, #tpu.memory_space<vmem>>, %arg10: memref<8x32xf32, #tpu.memory_space<vmem>>) attributes {dimension_semantics = [#tpu.dimension_semantics<parallel>, #tpu.dimension_semantics<arbitrary>], iteration_bounds = array<i64: 1, 1>, scalar_prefetch = 0 : i64, scratch_operands = 1 : i64, tpu.core_type = #tpu.core_type<tc>, window_params = [{transform_indices = @transform_0, window_bounds = array<i64: 8, 32>}, {transform_indices = @transform_1, window_bounds = array<i64: 8, 32>}, {transform_indices = @transform_2, window_bounds = array<i64: 8, 32>}, {pipeline_mode = #tpu.pipeline_mode<synchronous>, transform_indices = @transform_3, window_bounds = array<i64: 1, 32>}, {pipeline_mode = #tpu.pipeline_mode<synchronous>, transform_indices = @transform_4, window_bounds = array<i64: 1, 32>}, {transform_indices = @transform_5, window_bounds = array<i64: 32, 128>}, {transform_indices = @transform_6, window_bounds = array<i64: 1, 128>}, {transform_indices = @transform_7, window_bounds = array<i64: 8, 128>}]} {
    %c0_i32 = arith.constant 0 : i32
    %0 = arith.cmpi eq, %arg1, %c0_i32 : i32
    %1 = arith.extui %0 : i1 to i32
    %c0_i32_0 = arith.constant 0 : i32
    %2 = arith.cmpi ne, %1, %c0_i32_0 : i32
    scf.if %2 {
      %c0_8 = arith.constant 0 : index
      %c0_9 = arith.constant 0 : index
      %10 = vector.load %arg3[%c0_8, %c0_9] : memref<8x32xf32, #tpu.memory_space<vmem>>, vector<8x32xf32>
      %c0_10 = arith.constant 0 : index
      %c0_11 = arith.constant 0 : index
      %11 = vector.load %arg4[%c0_10, %c0_11] : memref<8x32xf32, #tpu.memory_space<vmem>>, vector<8x32xf32>
      %12 = arith.addf %10, %11 : vector<8x32xf32>
      %c0_12 = arith.constant 0 : index
      %c0_13 = arith.constant 0 : index
      %13 = vector.load %arg2[%c0_12, %c0_13] : memref<8x32xf32, #tpu.memory_space<vmem>>, vector<8x32xf32>
      %14 = arith.addf %12, %13 : vector<8x32xf32>
      %cst_14 = arith.constant dense<0.000000e+00> : vector<8xf32>
      %15 = vector.multi_reduction <add>, %14, %cst_14 [1] : vector<8x32xf32> to vector<8xf32>
      %16 = vector.shape_cast %15 : vector<8xf32> to vector<8x1xf32>
      %cst_15 = arith.constant 3.200000e+01 : f32
      %17 = vector.broadcast %cst_15 : f32 to vector<8x1xf32>
      %18 = arith.divf %16, %17 : vector<8x1xf32>
      %19 = vector.broadcast %18 : vector<8x1xf32> to vector<8x32xf32>
      %20 = arith.subf %14, %19 : vector<8x32xf32>
      %21 = arith.mulf %20, %20 : vector<8x32xf32>
      %cst_16 = arith.constant dense<0.000000e+00> : vector<8xf32>
      %22 = vector.multi_reduction <add>, %21, %cst_16 [1] : vector<8x32xf32> to vector<8xf32>
      %23 = vector.shape_cast %22 : vector<8xf32> to vector<8x1xf32>
      %cst_17 = arith.constant 0.0322580636 : f32
      %24 = vector.broadcast %cst_17 : f32 to vector<8x1xf32>
      %25 = arith.mulf %23, %24 : vector<8x1xf32>
      %26 = math.sqrt %25 : vector<8x1xf32>
      %cst_18 = arith.constant 9.99999997E-7 : f32
      %27 = vector.broadcast %cst_18 : f32 to vector<8x1xf32>
      %28 = arith.addf %26, %27 : vector<8x1xf32>
      %cst_19 = arith.constant 1.000000e+00 : f32
      %29 = vector.broadcast %cst_19 : f32 to vector<8x1xf32>
      %30 = arith.divf %29, %28 : vector<8x1xf32>
      %31 = vector.broadcast %30 : vector<8x1xf32> to vector<8x32xf32>
      %32 = arith.mulf %20, %31 : vector<8x32xf32>
      %c0_20 = arith.constant 0 : index
      %c0_21 = arith.constant 0 : index
      %33 = vector.load %arg5[%c0_20, %c0_21] : memref<1x32xf32, #tpu.memory_space<vmem>>, vector<1x32xf32>
      %34 = vector.broadcast %33 : vector<1x32xf32> to vector<8x32xf32>
      %35 = arith.mulf %32, %34 : vector<8x32xf32>
      %c0_22 = arith.constant 0 : index
      %c0_23 = arith.constant 0 : index
      %36 = vector.load %arg6[%c0_22, %c0_23] : memref<1x32xf32, #tpu.memory_space<vmem>>, vector<1x32xf32>
      %37 = vector.broadcast %36 : vector<1x32xf32> to vector<8x32xf32>
      %38 = arith.addf %35, %37 : vector<8x32xf32>
      %c0_24 = arith.constant 0 : index
      %c0_25 = arith.constant 0 : index
      %39 = vector.load %arg10[%c0_24, %c0_25] : memref<8x32xf32, #tpu.memory_space<vmem>>, vector<8x32xf32>
      tpu.vector_store %arg10[%c0_24, %c0_25], %38 {strides = array<i32>} : memref<8x32xf32, #tpu.memory_space<vmem>>, vector<8x32xf32>,
    } else {
    }
    %c0 = arith.constant 0 : index
    %c0_1 = arith.constant 0 : index
    %3 = vector.load %arg7[%c0, %c0_1] : memref<32x128xf32, #tpu.memory_space<vmem>>, vector<32x128xf32>
    %c0_2 = arith.constant 0 : index
    %c0_3 = arith.constant 0 : index
    %4 = vector.load %arg10[%c0_2, %c0_3] : memref<8x32xf32, #tpu.memory_space<vmem>>, vector<8x32xf32>
    %cst = arith.constant dense<0.000000e+00> : vector<8x128xf32>
    %5 = tpu.matmul %4, %3, %cst {dimension_numbers = #tpu.dot_dimension_numbers<[1], [0], [0], [1], [0, 0, 1, 1], [], []>} : vector<8x32xf32>, vector<32x128xf32>, vector<8x128xf32> -> vector<8x128xf32>
    %c0_4 = arith.constant 0 : index
    %c0_5 = arith.constant 0 : index
    %6 = vector.load %arg8[%c0_4, %c0_5] : memref<1x128xf32, #tpu.memory_space<vmem>>, vector<1x128xf32>
    %7 = vector.broadcast %6 : vector<1x128xf32> to vector<8x128xf32>
    %8 = arith.addf %5, %7 : vector<8x128xf32>
    %c0_6 = arith.constant 0 : index
    %c0_7 = arith.constant 0 : index
    %9 = vector.load %arg9[%c0_6, %c0_7] : memref<8x128xf32, #tpu.memory_space<vmem>>, vector<8x128xf32>
    tpu.vector_store %arg9[%c0_6, %c0_7], %8 {strides = array<i32>} : memref<8x128xf32, #tpu.memory_space<vmem>>, vector<8x128xf32>,
    return
  }
  func.func @transform_0(%arg0: i32, %arg1: i32) -> (i32, i32) {
    %c0_i32 = arith.constant 0 : i32
    %c0_i32_0 = arith.constant 0 : i32
    return %arg0, %c0_i32 : i32, i32
  }
  func.func @transform_1(%arg0: i32, %arg1: i32) -> (i32, i32) {
    %c0_i32 = arith.constant 0 : i32
    %c0_i32_0 = arith.constant 0 : i32
    return %arg0, %c0_i32 : i32, i32
  }
  func.func @transform_2(%arg0: i32, %arg1: i32) -> (i32, i32) {
    %c0_i32 = arith.constant 0 : i32
    %c0_i32_0 = arith.constant 0 : i32
    return %arg0, %c0_i32 : i32, i32
  }
  func.func @transform_3(%arg0: i32, %arg1: i32) -> (i32, i32) {
    %c0_i32 = arith.constant 0 : i32
    %c0_i32_0 = arith.constant 0 : i32
    %c0_i32_1 = arith.constant 0 : i32
    return %c0_i32, %c0_i32_0 : i32, i32
  }
  func.func @transform_4(%arg0: i32, %arg1: i32) -> (i32, i32) {
    %c0_i32 = arith.constant 0 : i32
    %c0_i32_0 = arith.constant 0 : i32
    %c0_i32_1 = arith.constant 0 : i32
    return %c0_i32, %c0_i32_0 : i32, i32
  }
  func.func @transform_5(%arg0: i32, %arg1: i32) -> (i32, i32) {
    %c0_i32 = arith.constant 0 : i32
    %c0_i32_0 = arith.constant 0 : i32
    return %c0_i32, %arg1 : i32, i32
  }
  func.func @transform_6(%arg0: i32, %arg1: i32) -> (i32, i32) {
    %c0_i32 = arith.constant 0 : i32
    %c0_i32_0 = arith.constant 0 : i32
    return %c0_i32, %arg1 : i32, i32
  }
  func.func @transform_7(%arg0: i32, %arg1: i32) -> (i32, i32) {
    %c0_i32 = arith.constant 0 : i32
    return %arg0, %arg1 : i32, i32
  }
}

</mosaic_0001>

<bundles_post_ra>
// kernel: tpu_custom_call.1
= control target key start
LH: loop header
LB: loop body
LE: loop exit
PB: predicated region body
PF: predicated region fallthrough
CT: control target
= control target key end

     0   :  { %12 = vsyncpa [#allocation4], 0  ;;  %s517_s0 = inlined_call_operand.hbm [shape: f32[8,32], index: 0, kind: input, shape index: {}]   ;;  %s518_s1 = inlined_call_operand.hbm [shape: f32[8,32], index: 1, kind: input, shape index: {}]   ;;  %s519_s2 = inlined_call_operand.hbm [shape: f32[8,32], index: 2, kind: input, shape index: {}]   ;;  %s520_s3 = inlined_call_operand.vmem [shape: f32[1,32], index: 3, kind: input, shape index: {}]   ;;  %s521_s4 = inlined_call_operand.vmem [shape: f32[1,32], index: 4, kind: input, shape index: {}]   ;;  %s522_s5 = inlined_call_operand.hbm [shape: f32[32,128], index: 5, kind: input, shape index: {}]   ;;  %s523_s6 = inlined_call_operand.vmem [shape: f32[1,128], index: 6, kind: input, shape index: {}]   ;;  %s524_s7 = inlined_call_operand.hbm [shape: f32[8,128], index: 7, kind: output, shape index: {}]  }
   0x1   :  { %13 = vsyncpa [#allocation7], 0 }
   0x2   :  { %14 = vsyncpa [#allocation10], 0 }
   0x3   :  { %15 = vsyncpa [#allocation5], 0  ;;  %s387_s24 = smov [#allocation6]   ;;  %s388_s26 = smov [#allocation3]  }
   0x4   :  { %s32_s25 = sshll.u32 %s387_s24, 4  ;;  %s22_s27 = sshll.u32 %s388_s26, 4  ;;  %s33_s25 = int_to_ptr.vmem [resolvable:$true] %s32_s25  ;;  %s23_s27 = int_to_ptr.vmem [resolvable:$true] %s22_s27 }
   0x5   :  { %s269_s30 = scalar_lea.hbm %s518_s1, 128 }
   0x6   :  { %p270_p0 = scmp.ne.s32.totalorder %s518_s1, %s269_s30  ;;  %p273_p1 = scmp.lt.u32.totalorder %s269_s30, %s518_s1 }
   0x8   :  { %p275_p2 = pnand %p273_p1, %p270_p0 }
   0xa   :  { %278 = shalt.err (!%p275_p2)
}
   0xb   :  { %s279_s12 = scalar_lea.vmem %s33_s25, 128  ;;  %p284_p4 = scmp.lt.s32.totalorder %s33_s25, %s33_s25 }
   0xc   :  { %p280_p3 = scmp.ne.s32.totalorder %s33_s25, %s279_s12  ;;  %p285_p5 = scmp.lt.s32.totalorder %s279_s12, %s279_s12 }
   0xe   :  { %p286_p6 = por %p285_p5, %p284_p4 }
  0x10   :  { %p287_p7 = pnand %p286_p6, %p280_p3 }
  0x12   :  { %290 = shalt.err (!%p287_p7)
}
  0x13   :  { %35 = dma.hbm_to_vmem [thread:$0]  %s518_s1, 128, %s33_s25, [#allocation7]  }
  0x14   :  { %s291_s17 = scalar_lea.hbm %s517_s0, 128 }
  0x15   :  { %p292_p8 = scmp.ne.s32.totalorder %s517_s0, %s291_s17  ;;  %p295_p9 = scmp.lt.u32.totalorder %s291_s17, %s517_s0 }
  0x17   :  { %p297_p10 = pnand %p295_p9, %p292_p8 }
  0x19   :  { %300 = shalt.err (!%p297_p10)
}
  0x1a   :  { %s301_s22 = scalar_lea.vmem %s23_s27, 128  ;;  %p306_p12 = scmp.lt.s32.totalorder %s23_s27, %s23_s27 }
  0x1b   :  { %p302_p11 = scmp.ne.s32.totalorder %s23_s27, %s301_s22  ;;  %p307_p13 = scmp.lt.s32.totalorder %s301_s22, %s301_s22 }
  0x1d   :  { %p308_p0 = por %p307_p13, %p306_p12 }
  0x1f   :  { %p309_p1 = pnand %p308_p0, %p302_p11 }
  0x21   :  { %312 = shalt.err (!%p309_p1)
}
  0x22   :  { %25 = dma.hbm_to_vmem [thread:$0]  %s517_s0, 128, %s23_s27, [#allocation4]  }
  0x23   :  { %s389_s24 = smov [#allocation8]   ;;  %s390_s26 = smov [#allocation9]  }
  0x24   :  { %s42_s25 = sshll.u32 %s389_s24, 4  ;;  %s55_s28 = sshll.u32 %s390_s26, 4  ;;  %s43_s25 = int_to_ptr.vmem [resolvable:$true] %s42_s25  ;;  %s461_s28 = int_to_ptr.vmem [resolvable:$true] %s55_s28 }
  0x25   :  { %s313_s8 = scalar_lea.hbm %s519_s2, 128 }
  0x26   :  { %p314_p2 = scmp.ne.s32.totalorder %s519_s2, %s313_s8  ;;  %p317_p3 = scmp.lt.u32.totalorder %s313_s8, %s519_s2 }
  0x28   :  { %p319_p4 = pnand %p317_p3, %p314_p2 }
  0x2a   :  { %322 = shalt.err (!%p319_p4)
}
  0x2b   :  { %s323_s0 = scalar_lea.vmem %s43_s25, 128  ;;  %p328_p6 = scmp.lt.s32.totalorder %s43_s25, %s43_s25 }
  0x2c   :  { %p324_p5 = scmp.ne.s32.totalorder %s43_s25, %s323_s0  ;;  %p329_p7 = scmp.lt.s32.totalorder %s323_s0, %s323_s0 }
  0x2e   :  { %p330_p8 = por %p329_p7, %p328_p6 }
  0x30   :  { %p331_p9 = pnand %p330_p8, %p324_p5 }
  0x32   :  { %334 = shalt.err (!%p331_p9)
}
  0x33   :  { %45 = dma.hbm_to_vmem [thread:$0]  %s519_s2, 128, %s43_s25, [#allocation7]  }
  0x34   :  { %s335_s16 = scalar_lea.hbm %s522_s5, 512 }
  0x35   :  { %p336_p10 = scmp.ne.s32.totalorder %s522_s5, %s335_s16  ;;  %p339_p11 = scmp.lt.u32.totalorder %s335_s16, %s522_s5 }
  0x37   :  { %p341_p12 = pnand %p339_p11, %p336_p10 }
  0x39   :  { %344 = shalt.err (!%p341_p12)
}
  0x3a   :  { %s345_s21 = scalar_lea.vmem %s461_s28, 512  ;;  %p350_p0 = scmp.lt.s32.totalorder %s461_s28, %s461_s28 }
  0x3b   :  { %p346_p13 = scmp.ne.s32.totalorder %s461_s28, %s345_s21  ;;  %p351_p1 = scmp.lt.s32.totalorder %s345_s21, %s345_s21 }
  0x3d   :  { %p352_p2 = por %p351_p1, %p350_p0 }
  0x3f   :  { %p353_p3 = pnand %p352_p2, %p346_p13 }
  0x41   :  { %356 = shalt.err (!%p353_p3)
}
  0x42   :  { %s391_s2 = smov 128   ;;  %s392_s22 = smov 8  }
  0x43   :  { %61 = dma.hbm_to_vmem [thread:$0]  %s522_s5, 512, %s461_s28, [#allocation10], %s391_s2, %s391_s2, %s392_s22  }
  0x44   :  { %379 = dma.done.wait [#allocation4], 128  }
  0x45   :  { %380 = vsyncadd [#allocation4], 4294967168 }
  0x46   :  { %381 = dma.done.wait [#allocation7], 256  }
  0x47   :  { %382 = vsyncadd [#allocation7], 4294967040 }
  0x48   :  { %383 = dma.done.wait [#allocation10], 512  }
  0x49   :  { %384 = vsyncadd [#allocation10], 4294966784  ;;  %v80_v0 = vld [vmem:[#allocation6] sm:$0xff]  ;;  %v81_v1 = vld [vmem:[#allocation8] sm:$0xff]  ;;  %vm85_vm0 = vcmask 261120   ;;  %v393_v14 = vmov 0.0|0.0  }
  0x4a   :  { %v83_v2 = vld [vmem:[#allocation3] sm:$0xff]  ;;  %v82_v3 = vadd.f32 %v81_v1, %v80_v0  ;;  %v125_v11 = vld [vmem:[#allocation9] sm:$0xff]  ;;  %249 = vmatprep.subr.bf16.mxu0 %v393_v14  ;;  %v127_v15 = vld [vmem:[#allocation9 + $0x10] sm:$0xff]  ;;  %vm394_vm1 = vmmov 0   ;;  %v395_v18 = vmov 0.0   ;;  %s396_s30 = smov [#allocation11]  }
  0x4b   :  { %v126_v12 = vld [vmem:[#allocation9 + $0x8] sm:$0xff]  ;;  %v128_v16 = vld [vmem:[#allocation9 + $0x18] sm:$0xff]  ;;  %246 = vmatprep.mubr.msk.f32.mxu0 %vm394_vm1, %v395_v18  ;;  %v229_v28 = vld [vmem:[%s520_s3] ss:$0 sm:$0xff]  ;;  %s218_s8 = sshll.u32 %s396_s30, 4  ;;  %s219_s8 = int_to_ptr.vmem [resolvable:$true] %s218_s8 }
  0x4c   :  { %v84_v4 = vadd.f32 %v83_v2, %v82_v3  ;;  %v250_v13 = vpack.c.bf16 %v126_v12, %v125_v11  ;;  %v253_v17 = vpack.c.bf16 %v128_v16, %v127_v15  ;;  %v230_v30 = vld [vmem:[%s521_s4] ss:$0 sm:$0xff]  ;;  %s357_s3 = scalar_lea.vmem %s219_s8, 128  ;;  %p362_p5 = scmp.lt.s32.totalorder %s219_s8, %s219_s8 }
  0x4d   :  { %v231_v34 = vld [vmem:[%s523_s6] ss:$0 sm:$0xff]  ;;  %p358_p4 = scmp.ne.s32.totalorder %s219_s8, %s357_s3  ;;  %p363_p6 = scmp.lt.s32.totalorder %s357_s3, %s357_s3 }
  0x4e   :  { %v86_v5 = vsel %vm85_vm0, %v84_v4, 0.0  ;;  %251 = vmatpush3.bf16.msra.mxu0 %v250_v13 }
  0x4f   :  { %87 = vadd.xlane.f32.xlu0 %v86_v5  ;;  %252 = vmatprep.subr.bf16.mxu0 %v393_v14  ;;  %p364_p7 = por %p363_p6, %p362_p5 }
  0x51   :  { %p365_p8 = pnand %p364_p7, %p358_p4 }
  0x52   :  { %254 = vmatpush3.bf16.msra.mxu0 %v253_v17 }
  0xdc   :  { %v88_v6 = vpop.xlane.xlu0 %87 }
  0xdd   :  { %v90_v7 = vmul.f32 0.03125, %v88_v6 }
  0xdf   :  { %v91_v8 = vsub.f32 %v84_v4, %v90_v7 }
  0xe1   :  { %v92_v9 = vmul.f32 %v91_v8, %v91_v8 }
  0xe3   :  { %v93_v10 = vsel %vm85_vm0, %v92_v9, 0.0 }
  0xe4   :  { %94 = vadd.xlane.f32.xlu0 %v93_v10 }
 0x171   :  { %v95_v19 = vpop.xlane.xlu0 %94 }
 0x172   :  { %v96_v20 = vmul.f32 0.032258064, %v95_v19 }
 0x174   :  { %265 = vrsqrt.f32 %v96_v20  ;;  %vm99_vm2 = vcmp.eq.f32.partialorder %v96_v20, inf  ;;  %v102_v23 = vand.u32 2147483648, %v96_v20  ;;  %vm101_vm3 = vcmp.eq.f32.partialorder %v96_v20, 0.0 }
 0x17e   :  { %v266_v21 = vpop.eup %265 }
 0x17f   :  { %v98_v22 = vmul.f32 %v266_v21, %v96_v20 }
 0x181   :  { %v100_v24 = vsel %vm99_vm2, %v96_v20, %v98_v22 }
 0x182   :  { %v103_v25 = vsel %vm101_vm3, %v102_v23, %v100_v24 }
 0x183   :  { %v104_v26 = vadd.f32 1e-06, %v103_v25 }
 0x185   :  { %267 = vrcp.f32 %v104_v26 }
 0x18f   :  { %v268_v27 = vpop.eup %267 }
 0x190   :  { %v107_v29 = vmul.f32 %v268_v27, %v91_v8 }
 0x192   :  { %v115_v31 = vmul.f32 %v229_v28, %v107_v29 }
 0x194   :  { %v123_v32 = vadd.f32 %v230_v30, %v115_v31 }
 0x196   :  { %124 = vst.msk [vmem:[#allocation2] sm:$0xff] %vm85_vm0, %v123_v32 }
 0x19d   :  { %v129_v33 = vld [vmem:[#allocation2] sm:$0xff] }
 0x19e   :  { %247 = vmatmul.mubr.msk.f32.vlgmr.msra.gmra.mrb[0].mxu0 %vm85_vm0, %v129_v33 }
 0x271   :  { %v207_v35 = vpop.f32.mrb[0].mxu0 }
 0x272   :  { %v208_v36 = vadd.f32 %v231_v34, %v207_v35  ;;  %v248_v37 = vpop.f32.mrb[1].mxu0 }
 0x274   :  { %211 = vst [vmem:[#allocation11] sm:$0xff] %v208_v36 }
 0x275   :  { %368 = shalt.err (!%p365_p8)
}
 0x276   :  { %s369_s10 = scalar_lea.hbm %s524_s7, 128 }
 0x277   :  { %p370_p9 = scmp.ne.s32.totalorder %s524_s7, %s369_s10  ;;  %p373_p10 = scmp.lt.u32.totalorder %s369_s10, %s524_s7 }
 0x279   :  { %p375_p11 = pnand %p373_p10, %p370_p9 }
 0x27b   :  { %378 = shalt.err (!%p375_p11)
}
 0x27c   :  { %221 = dma.vmem_to_hbm [thread:$0]  %s219_s8, 128, %s524_s7, [#allocation5]  }
 0x27d   :  { %385 = dma.done.wait [#allocation5], 128  }
 0x27e   :  { %386 = vsyncadd [#allocation5], 4294967168 }
 0x27f   :  { %225 = vsyncpa [#allocation4], 1 }
 0x280   :  { %226 = vsyncpa [#allocation7], 1 }
 0x281   :  { %227 = vsyncpa [#allocation10], 1 }
 0x282   :  { %228 = vsyncpa [#allocation5], 1 }

</bundles_post_ra>
